<compile_context>
chip_gen: v7x
topology: tpu7x:2x2x1
jax: 0.10.0
libtpu: 0.0.40
codegen_flags: <defaults>
</compile_context>

<pallas_src>
import jax
import jax.numpy as jnp
from jax.experimental import pallas as pl
from jax.experimental.pallas import tpu as pltpu


def swishglu_kernel(x_ref, w12_ref, b12_ref, w3_ref, b3_ref, o_ref, acc_ref):
    # x_ref:   (tm, d_model_p)            row tile (invariant along k)
    # w12_ref: (d_model_p, 2*tk)          [w1_k | w2_k] fused gate-weight tile
    # b12_ref: (1, 2*tk)                  [b1_k | b2_k]
    # w3_ref:  (tk, d_model_p)            down-projection tile
    # b3_ref:  (1, d_model_p)             output bias (constant)
    # acc_ref: (tm, d_model_p) f32        accumulator over the d_ffn axis
    k = pl.program_id(1)
    tk = w3_ref.shape[0]

    @pl.when(k == 0)
    def _():
        acc_ref[...] = jnp.zeros_like(acc_ref)

    x = x_ref[...]  # keep operand dtype (bf16 stays bf16 -> full MXU rate)

    # Fused gate projection: one matmul produces [h1 | h2], f32 accumulation.
    h12 = jnp.dot(x, w12_ref[...], preferred_element_type=jnp.float32)
    h12 = h12 + b12_ref[...]
    h1 = h12[:, :tk]
    h2 = h12[:, tk:]

    # SwishGLU gate in f32 (EUP sigmoid + VPU mul), cast back for the MXU.
    h = (jax.nn.sigmoid(h1) * h2).astype(x.dtype)

    acc_ref[...] += jnp.dot(h, w3_ref[...], preferred_element_type=jnp.float32)

    @pl.when(k == pl.num_programs(1) - 1)
    def _():
        o_ref[...] = (acc_ref[...] + b3_ref[...]).astype(o_ref.dtype)


def _round_up(x, m):
    return ((x + m - 1) // m) * m


def _pad2(a, rows, cols):
    r, c = a.shape
    if r == rows and c == cols:
        return a
    return jnp.pad(a, ((0, rows - r), (0, cols - c)))


def swishglu(x, w1, b1, w2, b2, w3, b3, *, tm=256, tk=512,
             vmem_limit_bytes=64 * 1024 * 1024):
    """x: [B, S, d_model]; w1,w2: [d_model, d_ffn]; w3: [d_ffn, d_model];
    biases kept 2D as [1, d_ffn] / [1, d_model] for TPU-friendly layout.

    Note: defaults (tm=256, tk=512) are sized for bf16 production shapes under
    a 64 MiB VMEM budget (v7x-safe). For very large f32 problems lower tm/tk or
    raise vmem_limit_bytes.
    """
    B, S, d_model = x.shape
    d_ffn = w1.shape[1]
    M = B * S

    # Tile sizes: clamp to the (padded) problem, keep TPU-friendly multiples.
    d_model_p = _round_up(d_model, 128)          # lane-dense output slab
    tm = min(tm, _round_up(M, 8))                # sublane multiple
    tk = min(tk, _round_up(d_ffn, 128))          # lane multiple (slice point)
    M_p = _round_up(M, tm)
    d_ffn_p = _round_up(d_ffn, tk)
    K = d_ffn_p // tk

    x2 = _pad2(x.reshape(M, d_model), M_p, d_model_p)

    # Zero-pad weights/biases; padded hidden columns produce exactly zero
    # contribution (b1/b2 pad = 0 -> gate = sigmoid(0)*0 = 0, w3 pad rows = 0).
    w1p = _pad2(w1, d_model_p, d_ffn_p)
    w2p = _pad2(w2, d_model_p, d_ffn_p)
    b1p = _pad2(b1, 1, d_ffn_p)
    b2p = _pad2(b2, 1, d_ffn_p)
    w3p = _pad2(w3, d_ffn_p, d_model_p)
    b3p = _pad2(b3, 1, d_model_p)

    # Fuse the two gate projections, interleaved per k-tile so that grid step k
    # loads one contiguous [w1_k | w2_k] block of width 2*tk.
    w12 = jnp.concatenate(
        [w1p.reshape(d_model_p, K, tk), w2p.reshape(d_model_p, K, tk)], axis=2
    ).reshape(d_model_p, 2 * d_ffn_p)
    b12 = jnp.concatenate(
        [b1p.reshape(1, K, tk), b2p.reshape(1, K, tk)], axis=2
    ).reshape(1, 2 * d_ffn_p)

    grid = (M_p // tm, K)

    itemsize = jnp.dtype(x.dtype).itemsize
    cost = pl.CostEstimate(
        flops=2 * M * d_model * d_ffn * 3,          # w1 + w2 + w3 matmuls
        transcendentals=M * d_ffn,                  # sigmoid
        bytes_accessed=(x2.size + w12.size + w3p.size + M * d_model) * itemsize,
    )

    out2 = pl.pallas_call(
        swishglu_kernel,
        out_shape=jax.ShapeDtypeStruct((M_p, d_model_p), x.dtype),
        grid_spec=pltpu.PrefetchScalarGridSpec(
            num_scalar_prefetch=0,
            grid=grid,
            in_specs=[
                pl.BlockSpec((tm, d_model_p), lambda i, k: (i, 0)),      # x tile
                pl.BlockSpec((d_model_p, 2 * tk), lambda i, k: (0, k)),  # w12 tile
                pl.BlockSpec((1, 2 * tk), lambda i, k: (0, k)),          # b12 tile
                pl.BlockSpec((tk, d_model_p), lambda i, k: (k, 0)),      # w3 tile
                pl.BlockSpec((1, d_model_p), lambda i, k: (0, 0)),       # b3
            ],
            out_specs=pl.BlockSpec((tm, d_model_p), lambda i, k: (i, 0)),
            scratch_shapes=[pltpu.VMEM((tm, d_model_p), jnp.float32)],
        ),
        compiler_params=pltpu.CompilerParams(
            dimension_semantics=("parallel", "arbitrary"),
            vmem_limit_bytes=vmem_limit_bytes,
        ),
        cost_estimate=cost,
    )(x2, w12, b12, w3p, b3p)

    return out2[:M, :d_model].reshape(B, S, d_model)


def init_params(key, d_model, d_ffn, dtype=jnp.float32):
    """Deterministic synthetic init mimicking nn.Linear shapes.
    PyTorch stores weight as (out, in); we store the transpose (in, out)."""
    k1, k2, k3, k4, k5, k6 = jax.random.split(key, 6)
    s1 = 1.0 / jnp.sqrt(d_model)
    s3 = 1.0 / jnp.sqrt(d_ffn)
    w1 = jax.random.uniform(k1, (d_model, d_ffn), dtype, -s1, s1)
    b1 = jax.random.uniform(k2, (1, d_ffn), dtype, -s1, s1)
    w2 = jax.random.uniform(k3, (d_model, d_ffn), dtype, -s1, s1)
    b2 = jax.random.uniform(k4, (1, d_ffn), dtype, -s1, s1)
    w3 = jax.random.uniform(k5, (d_ffn, d_model), dtype, -s3, s3)
    b3 = jax.random.uniform(k6, (1, d_model), dtype, -s3, s3)
    return w1, b1, w2, b2, w3, b3


if __name__ == "__main__":
    key = jax.random.PRNGKey(0)
    B, S, d_model, d_ffn = 2, 8, 32, 64

    kx, kp = jax.random.split(key)
    x = jax.random.normal(kx, (B, S, d_model), dtype=jnp.float32)
    params = init_params(kp, d_model, d_ffn)

    out = swishglu(x, *params)
    out = jax.block_until_ready(out)

    # Pure-JAX reference check (f32 path; bf16 operands would need ~1e-2 rtol).
    w1, b1, w2, b2, w3, b3 = params
    x2 = x.reshape(-1, d_model)
    ref = (jax.nn.sigmoid(x2 @ w1 + b1) * (x2 @ w2 + b2)) @ w3 + b3
    ref = ref.reshape(B, S, d_model)
    assert out.shape == (B, S, d_model)
    assert jnp.allclose(out, ref, atol=1e-4, rtol=1e-4), "mismatch vs reference"

    print("KERNEL_OK")
</pallas_src>

<mosaic_0001>
module attributes {stable_mosaic.version = 11 : i64} {
  func.func @swishglu_kernel(%arg0: i32, %arg1: i32, %arg2: memref<16x128xf32, #tpu.memory_space<vmem>>, %arg3: memref<128x256xf32, #tpu.memory_space<vmem>>, %arg4: memref<1x256xf32, #tpu.memory_space<vmem>>, %arg5: memref<128x128xf32, #tpu.memory_space<vmem>>, %arg6: memref<1x128xf32, #tpu.memory_space<vmem>>, %arg7: memref<16x128xf32, #tpu.memory_space<vmem>>, %arg8: memref<16x128xf32, #tpu.memory_space<vmem>>) attributes {dimension_semantics = [#tpu.dimension_semantics<parallel>, #tpu.dimension_semantics<arbitrary>], iteration_bounds = array<i64: 1, 1>, scalar_prefetch = 0 : i64, scratch_operands = 1 : i64, tpu.core_type = #tpu.core_type<tc>, window_params = [{transform_indices = @transform_0, window_bounds = array<i64: 16, 128>}, {transform_indices = @transform_1, window_bounds = array<i64: 128, 256>}, {transform_indices = @transform_2, window_bounds = array<i64: 1, 256>}, {transform_indices = @transform_3, window_bounds = array<i64: 128, 128>}, {pipeline_mode = #tpu.pipeline_mode<synchronous>, transform_indices = @transform_4, window_bounds = array<i64: 1, 128>}, {transform_indices = @transform_5, window_bounds = array<i64: 16, 128>}]} {
    %c0_i32 = arith.constant 0 : i32
    %0 = arith.cmpi eq, %arg1, %c0_i32 : i32
    %1 = arith.extui %0 : i1 to i32
    %c0_i32_0 = arith.constant 0 : i32
    %2 = arith.cmpi ne, %1, %c0_i32_0 : i32
    scf.if %2 {
      %cst_16 = arith.constant 0.000000e+00 : f32
      %25 = vector.broadcast %cst_16 : f32 to vector<16x128xf32>
      %c0_17 = arith.constant 0 : index
      %c0_18 = arith.constant 0 : index
      %26 = vector.load %arg8[%c0_17, %c0_18] : memref<16x128xf32, #tpu.memory_space<vmem>>, vector<16x128xf32>
      tpu.vector_store %arg8[%c0_17, %c0_18], %25 {strides = array<i32>} : memref<16x128xf32, #tpu.memory_space<vmem>>, vector<16x128xf32>,
    } else {
    }
    %c0 = arith.constant 0 : index
    %c0_1 = arith.constant 0 : index
    %3 = vector.load %arg2[%c0, %c0_1] : memref<16x128xf32, #tpu.memory_space<vmem>>, vector<16x128xf32>
    %c0_2 = arith.constant 0 : index
    %c0_3 = arith.constant 0 : index
    %4 = vector.load %arg3[%c0_2, %c0_3] : memref<128x256xf32, #tpu.memory_space<vmem>>, vector<128x256xf32>
    %cst = arith.constant dense<0.000000e+00> : vector<16x256xf32>
    %5 = tpu.matmul %3, %4, %cst {dimension_numbers = #tpu.dot_dimension_numbers<[1], [0], [0], [1], [0, 0, 1, 1], [], []>} : vector<16x128xf32>, vector<128x256xf32>, vector<16x256xf32> -> vector<16x256xf32>
    %c0_4 = arith.constant 0 : index
    %c0_5 = arith.constant 0 : index
    %6 = vector.load %arg4[%c0_4, %c0_5] : memref<1x256xf32, #tpu.memory_space<vmem>>, vector<1x256xf32>
    %7 = vector.broadcast %6 : vector<1x256xf32> to vector<16x256xf32>
    %8 = arith.addf %5, %7 : vector<16x256xf32>
    %9 = vector.extract_strided_slice %8 {offsets = [0, 0], sizes = [16, 128], strides = [1, 1]} : vector<16x256xf32> to vector<16x128xf32>
    %10 = vector.extract_strided_slice %8 {offsets = [0, 128], sizes = [16, 128], strides = [1, 1]} : vector<16x256xf32> to vector<16x128xf32>
    %11 = arith.negf %9 : vector<16x128xf32>
    %12 = math.exp %11 : vector<16x128xf32>
    %cst_6 = arith.constant 1.000000e+00 : f32
    %13 = vector.broadcast %cst_6 : f32 to vector<16x128xf32>
    %14 = arith.addf %13, %12 : vector<16x128xf32>
    %15 = arith.divf %13, %14 : vector<16x128xf32>
    %16 = arith.mulf %15, %10 : vector<16x128xf32>
    %c0_7 = arith.constant 0 : index
    %c0_8 = arith.constant 0 : index
    %17 = vector.load %arg8[%c0_7, %c0_8] : memref<16x128xf32, #tpu.memory_space<vmem>>, vector<16x128xf32>
    %c0_9 = arith.constant 0 : index
    %c0_10 = arith.constant 0 : index
    %18 = vector.load %arg5[%c0_9, %c0_10] : memref<128x128xf32, #tpu.memory_space<vmem>>, vector<128x128xf32>
    %cst_11 = arith.constant dense<0.000000e+00> : vector<16x128xf32>
    %19 = tpu.matmul %16, %18, %cst_11 {dimension_numbers = #tpu.dot_dimension_numbers<[1], [0], [0], [1], [0, 0, 1, 1], [], []>} : vector<16x128xf32>, vector<128x128xf32>, vector<16x128xf32> -> vector<16x128xf32>
    %20 = arith.addf %17, %19 : vector<16x128xf32>
    %c0_12 = arith.constant 0 : index
    %c0_13 = arith.constant 0 : index
    %21 = vector.load %arg8[%c0_12, %c0_13] : memref<16x128xf32, #tpu.memory_space<vmem>>, vector<16x128xf32>
    tpu.vector_store %arg8[%c0_12, %c0_13], %20 {strides = array<i32>} : memref<16x128xf32, #tpu.memory_space<vmem>>, vector<16x128xf32>,
    %c0_i32_14 = arith.constant 0 : i32
    %22 = arith.cmpi eq, %arg1, %c0_i32_14 : i32
    %23 = arith.extui %22 : i1 to i32
    %c0_i32_15 = arith.constant 0 : i32
    %24 = arith.cmpi ne, %23, %c0_i32_15 : i32
    scf.if %24 {
      %c0_16 = arith.constant 0 : index
      %c0_17 = arith.constant 0 : index
      %25 = vector.load %arg8[%c0_16, %c0_17] : memref<16x128xf32, #tpu.memory_space<vmem>>, vector<16x128xf32>
      %c0_18 = arith.constant 0 : index
      %c0_19 = arith.constant 0 : index
      %26 = vector.load %arg6[%c0_18, %c0_19] : memref<1x128xf32, #tpu.memory_space<vmem>>, vector<1x128xf32>
      %27 = vector.broadcast %26 : vector<1x128xf32> to vector<16x128xf32>
      %28 = arith.addf %25, %27 : vector<16x128xf32>
      %c0_20 = arith.constant 0 : index
      %c0_21 = arith.constant 0 : index
      %29 = vector.load %arg7[%c0_20, %c0_21] : memref<16x128xf32, #tpu.memory_space<vmem>>, vector<16x128xf32>
      tpu.vector_store %arg7[%c0_20, %c0_21], %28 {strides = array<i32>} : memref<16x128xf32, #tpu.memory_space<vmem>>, vector<16x128xf32>,
    } else {
    }
    return
  }
  func.func @transform_0(%arg0: i32, %arg1: i32) -> (i32, i32) {
    %c0_i32 = arith.constant 0 : i32
    %c0_i32_0 = arith.constant 0 : i32
    return %arg0, %c0_i32 : i32, i32
  }
  func.func @transform_1(%arg0: i32, %arg1: i32) -> (i32, i32) {
    %c0_i32 = arith.constant 0 : i32
    %c0_i32_0 = arith.constant 0 : i32
    return %c0_i32, %arg1 : i32, i32
  }
  func.func @transform_2(%arg0: i32, %arg1: i32) -> (i32, i32) {
    %c0_i32 = arith.constant 0 : i32
    %c0_i32_0 = arith.constant 0 : i32
    return %c0_i32, %arg1 : i32, i32
  }
  func.func @transform_3(%arg0: i32, %arg1: i32) -> (i32, i32) {
    %c0_i32 = arith.constant 0 : i32
    %c0_i32_0 = arith.constant 0 : i32
    return %arg1, %c0_i32 : i32, i32
  }
  func.func @transform_4(%arg0: i32, %arg1: i32) -> (i32, i32) {
    %c0_i32 = arith.constant 0 : i32
    %c0_i32_0 = arith.constant 0 : i32
    %c0_i32_1 = arith.constant 0 : i32
    return %c0_i32, %c0_i32_0 : i32, i32
  }
  func.func @transform_5(%arg0: i32, %arg1: i32) -> (i32, i32) {
    %c0_i32 = arith.constant 0 : i32
    %c0_i32_0 = arith.constant 0 : i32
    return %arg0, %c0_i32 : i32, i32
  }
}

</mosaic_0001>

<bundles_post_ra>
// kernel: tpu_custom_call.1
= control target key start
LH: loop header
LB: loop body
LE: loop exit
PB: predicated region body
PF: predicated region fallthrough
CT: control target
= control target key end

     0   :  { %10 = vsyncpa [#allocation4], 0  ;;  %s763_s0 = inlined_call_operand.hbm [shape: f32[16,128], index: 0, kind: input, shape index: {}]   ;;  %s764_s1 = inlined_call_operand.hbm [shape: f32[128,256], index: 1, kind: input, shape index: {}]   ;;  %s765_s2 = inlined_call_operand.hbm [shape: f32[1,256], index: 2, kind: input, shape index: {}]   ;;  %s766_s3 = inlined_call_operand.hbm [shape: f32[128,128], index: 3, kind: input, shape index: {}]   ;;  %s767_s4 = inlined_call_operand.hbm [shape: f32[1,128], index: 4, kind: input, shape index: {}]   ;;  %s768_s5 = inlined_call_operand.hbm [shape: f32[16,128], index: 5, kind: output, shape index: {}]  }
   0x1   :  { %11 = vsyncpa [#allocation7], 0 }
   0x2   :  { %12 = vsyncpa [#allocation10], 0 }
   0x3   :  { %13 = vsyncpa [#allocation5], 0  ;;  %s639_s18 = smov [#allocation6]   ;;  %s499_s22 = scalar_lea.hbm %s764_s1, 4096 }
   0x4   :  { %s31_s19 = sshll.u32 %s639_s18, 4  ;;  %p500_p0 = scmp.ne.s32.totalorder %s764_s1, %s499_s22  ;;  %s32_s19 = int_to_ptr.vmem [resolvable:$true] %s31_s19 }
   0x5   :  { %p503_p1 = scmp.lt.u32.totalorder %s499_s22, %s764_s1 }
   0x7   :  { %p505_p2 = pnand %p503_p1, %p500_p0 }
   0x9   :  { %508 = shalt.err (!%p505_p2)
}
   0xa   :  { %s509_s27 = scalar_lea.vmem %s32_s19, 4096  ;;  %p514_p4 = scmp.lt.s32.totalorder %s32_s19, %s32_s19 }
   0xb   :  { %p510_p3 = scmp.ne.s32.totalorder %s32_s19, %s509_s27  ;;  %p515_p5 = scmp.lt.s32.totalorder %s509_s27, %s509_s27 }
   0xd   :  { %p516_p6 = por %p515_p5, %p514_p4 }
   0xf   :  { %p517_p7 = pnand %p516_p6, %p510_p3 }
  0x11   :  { %520 = shalt.err (!%p517_p7)
}
  0x12   :  { %s640_s28 = smov 256   ;;  %s641_s29 = smov 16  }
  0x13   :  { %37 = dma.hbm_to_vmem [thread:$0]  %s764_s1, 4096, %s32_s19, [#allocation7], %s640_s28, %s640_s28, %s641_s29  }
  0x14   :  { %s642_s7 = smov [#allocation9]   ;;  %s643_s9 = smov [#allocation3]  }
  0x15   :  { %s53_s8 = sshll.u32 %s642_s7, 4  ;;  %s19_s10 = sshll.u32 %s643_s9, 4  ;;  %s54_s8 = int_to_ptr.vmem [resolvable:$true] %s53_s8  ;;  %s20_s10 = int_to_ptr.vmem [resolvable:$true] %s19_s10 }
  0x16   :  { %s521_s13 = scalar_lea.hbm %s766_s3, 2048 }
  0x17   :  { %p522_p8 = scmp.ne.s32.totalorder %s766_s3, %s521_s13  ;;  %p525_p9 = scmp.lt.u32.totalorder %s521_s13, %s766_s3 }
  0x19   :  { %p527_p10 = pnand %p525_p9, %p522_p8 }
  0x1b   :  { %530 = shalt.err (!%p527_p10)
}
  0x1c   :  { %s531_s1 = scalar_lea.vmem %s54_s8, 2048  ;;  %p536_p12 = scmp.lt.s32.totalorder %s54_s8, %s54_s8 }
  0x1d   :  { %p532_p11 = scmp.ne.s32.totalorder %s54_s8, %s531_s1  ;;  %p537_p13 = scmp.lt.s32.totalorder %s531_s1, %s531_s1 }
  0x1f   :  { %p538_p0 = por %p537_p13, %p536_p12 }
  0x21   :  { %p539_p1 = pnand %p538_p0, %p532_p11 }
  0x23   :  { %542 = shalt.err (!%p539_p1)
}
  0x24   :  { %s644_s18 = smov 128   ;;  %s645_s19 = smov 8  }
  0x25   :  { %59 = dma.hbm_to_vmem [thread:$0]  %s766_s3, 2048, %s54_s8, [#allocation10], %s644_s18, %s644_s18, %s645_s19  }
  0x26   :  { %s543_s24 = scalar_lea.hbm %s763_s0, 256 }
  0x27   :  { %p544_p2 = scmp.ne.s32.totalorder %s763_s0, %s543_s24  ;;  %p547_p3 = scmp.lt.u32.totalorder %s543_s24, %s763_s0 }
  0x29   :  { %p549_p4 = pnand %p547_p3, %p544_p2 }
  0x2b   :  { %552 = shalt.err (!%p549_p4)
}
  0x2c   :  { %s553_s29 = scalar_lea.vmem %s20_s10, 256  ;;  %p558_p6 = scmp.lt.s32.totalorder %s20_s10, %s20_s10 }
  0x2d   :  { %p554_p5 = scmp.ne.s32.totalorder %s20_s10, %s553_s29  ;;  %p559_p7 = scmp.lt.s32.totalorder %s553_s29, %s553_s29 }
  0x2f   :  { %p560_p8 = por %p559_p7, %p558_p6 }
  0x31   :  { %p561_p9 = pnand %p560_p8, %p554_p5 }
  0x33   :  { %564 = shalt.err (!%p561_p9)
}
  0x34   :  { %25 = dma.hbm_to_vmem [thread:$0]  %s763_s0, 256, %s20_s10, [#allocation4], %s644_s18, %s644_s18, %s645_s19  }
  0x35   :  { %s646_s6 = smov [#allocation8]   ;;  %s647_s8 = smov [#allocation11]  }
  0x36   :  { %s44_s7 = sshll.u32 %s646_s6, 4  ;;  %s66_s9 = sshll.u32 %s647_s8, 4  ;;  %s45_s7 = int_to_ptr.vmem [resolvable:$true] %s44_s7  ;;  %s67_s9 = int_to_ptr.vmem [resolvable:$true] %s66_s9 }
  0x37   :  { %s565_s13 = scalar_lea.hbm %s765_s2, 32 }
  0x38   :  { %p566_p10 = scmp.ne.s32.totalorder %s765_s2, %s565_s13  ;;  %p569_p11 = scmp.lt.u32.totalorder %s565_s13, %s765_s2 }
  0x3a   :  { %p571_p12 = pnand %p569_p11, %p566_p10 }
  0x3c   :  { %574 = shalt.err (!%p571_p12)
}
  0x3d   :  { %s575_s0 = scalar_lea.vmem %s45_s7, 32  ;;  %p580_p0 = scmp.lt.s32.totalorder %s45_s7, %s45_s7 }
  0x3e   :  { %p576_p13 = scmp.ne.s32.totalorder %s45_s7, %s575_s0  ;;  %p581_p1 = scmp.lt.s32.totalorder %s575_s0, %s575_s0 }
  0x40   :  { %p582_p2 = por %p581_p1, %p580_p0 }
  0x42   :  { %p583_p3 = pnand %p582_p2, %p576_p13 }
  0x44   :  { %586 = shalt.err (!%p583_p3)
}
  0x45   :  { %47 = dma.hbm_to_vmem [thread:$0]  %s765_s2, 32, %s45_s7, [#allocation7]  }
  0x46   :  { %s587_s22 = scalar_lea.hbm %s767_s4, 16 }
  0x47   :  { %p588_p4 = scmp.ne.s32.totalorder %s767_s4, %s587_s22  ;;  %p591_p5 = scmp.lt.u32.totalorder %s587_s22, %s767_s4 }
  0x49   :  { %p593_p6 = pnand %p591_p5, %p588_p4 }
  0x4b   :  { %596 = shalt.err (!%p593_p6)
}
  0x4c   :  { %s597_s27 = scalar_lea.vmem %s67_s9, 16  ;;  %s601_s28 = scalar_lea.vmem %s67_s9, 32 }
  0x4d   :  { %p598_p7 = scmp.ne.s32.totalorder %s67_s9, %s597_s27  ;;  %p602_p8 = scmp.lt.s32.totalorder %s67_s9, %s67_s9 }
  0x4e   :  { %p603_p9 = scmp.lt.s32.totalorder %s601_s28, %s597_s27 }
  0x50   :  { %p604_p10 = por %p603_p9, %p602_p8 }
  0x52   :  { %p605_p11 = pnand %p604_p10, %p598_p7 }
  0x54   :  { %608 = shalt.err (!%p605_p11)
}
  0x55   :  { %69 = dma.hbm_to_vmem [thread:$0]  %s767_s4, 16, %s67_s9, [#allocation10]  }
  0x56   :  { %631 = dma.done.wait [#allocation4], 256  }
  0x57   :  { %632 = vsyncadd [#allocation4], 4294967040 }
  0x58   :  { %633 = dma.done.wait [#allocation7], 4128  }
  0x59   :  { %634 = vsyncadd [#allocation7], 4294963168 }
  0x5a   :  { %635 = dma.done.wait [#allocation10], 2064  }
  0x5b   :  { %636 = vsyncadd [#allocation10], 4294965232  ;;  %v648_v0 = vmov 0.0   ;;  %v94_v1 = vld [vmem:[#allocation6 + $0x8] sm:$0xff]  ;;  %v96_v2 = vld [vmem:[#allocation6 + $0x18] sm:$0xff]  ;;  %s649_s4 = smov [#allocation12]  }
  0x5c   :  { %201 = vmatprep.mubr.f32.mxu0 %v648_v0  ;;  %v93_v3 = vld [vmem:[#allocation6] sm:$0xff]  ;;  %v416_v4 = vpack.c.bf16 %v96_v2, %v94_v1  ;;  %v95_v5 = vld [vmem:[#allocation6 + $0x10] sm:$0xff]  ;;  %v98_v6 = vld [vmem:[#allocation6 + $0x28] sm:$0xff]  ;;  %s346_s3 = sshll.u32 %s649_s4, 4  ;;  %s347_s3 = int_to_ptr.vmem [resolvable:$true] %s346_s3 }
  0x5d   :  { %v100_v7 = vld [vmem:[#allocation6 + $0x38] sm:$0xff]  ;;  %v418_v8 = vpack.c.bf16 %v95_v5, %v93_v3  ;;  %v97_v10 = vld [vmem:[#allocation6 + $0x20] sm:$0xff]  ;;  %v99_v11 = vld [vmem:[#allocation6 + $0x30] sm:$0xff]  ;;  %s609_s30 = scalar_lea.vmem %s347_s3, 256  ;;  %p614_p13 = scmp.lt.s32.totalorder %s347_s3, %s347_s3 }
  0x5e   :  { %v420_v9 = vpack.c.bf16 %v100_v7, %v98_v6  ;;  %v102_v12 = vld [vmem:[#allocation6 + $0x48] sm:$0xff]  ;;  %417 = vmatprep.subr.bf16.mxu0 %v416_v4  ;;  %v104_v13 = vld [vmem:[#allocation6 + $0x58] sm:$0xff]  ;;  %v422_v14 = vpack.c.bf16 %v99_v11, %v97_v10  ;;  %v101_v16 = vld [vmem:[#allocation6 + $0x40] sm:$0xff]  ;;  %v127_v11 = vlaneseq  ;;  %p610_p12 = scmp.ne.s32.totalorder %s347_s3, %s609_s30  ;;  %p615_p0 = scmp.lt.s32.totalorder %s609_s30, %s609_s30 }
  0x5f   :  { %419 = vmatpush1.bf16.msra.mxu0 %v418_v8  ;;  %v424_v15 = vpack.c.bf16 %v104_v13, %v102_v12  ;;  %v103_v17 = vld [vmem:[#allocation6 + $0x50] sm:$0xff]  ;;  %v106_v18 = vld [vmem:[#allocation6 + $0x68] sm:$0xff]  ;;  %v108_v19 = vld [vmem:[#allocation6 + $0x78] sm:$0xff] }
  0x60   :  { %421 = vmatprep.subr.bf16.mxu0 %v420_v9  ;;  %v426_v20 = vpack.c.bf16 %v103_v17, %v101_v16  ;;  %v428_v21 = vpack.c.bf16 %v108_v19, %v106_v18  ;;  %v105_v22 = vld [vmem:[#allocation6 + $0x60] sm:$0xff]  ;;  %v107_v23 = vld [vmem:[#allocation6 + $0x70] sm:$0xff]  ;;  %v110_v24 = vld [vmem:[#allocation6 + $0x88] sm:$0xff]  ;;  %v128_v12 = vshrl.u32 %v127_v11, 7  ;;  %p616_p1 = por %p615_p0, %p614_p13 }
  0x61   :  { %v112_v25 = vld [vmem:[#allocation6 + $0x98] sm:$0xff]  ;;  %v430_v26 = vpack.c.bf16 %v107_v23, %v105_v22  ;;  %v109_v28 = vld [vmem:[#allocation6 + $0x80] sm:$0xff]  ;;  %v111_v29 = vld [vmem:[#allocation6 + $0x90] sm:$0xff] }
  0x62   :  { %v432_v27 = vpack.c.bf16 %v112_v25, %v110_v24  ;;  %v114_v30 = vld [vmem:[#allocation6 + $0xa8] sm:$0xff]  ;;  %v116_v31 = vld [vmem:[#allocation6 + $0xb8] sm:$0xff]  ;;  %v434_v32 = vpack.c.bf16 %v111_v29, %v109_v28  ;;  %v113_v34 = vld [vmem:[#allocation6 + $0xa0] sm:$0xff]  ;;  %v129_v13 = vsub.s32 0, %v128_v12  ;;  %p617_p2 = pnand %p616_p1, %p610_p12 }
  0x63   :  { %423 = vmatpush1.bf16.msra.mxu0 %v422_v14  ;;  %v436_v33 = vpack.c.bf16 %v116_v31, %v114_v30  ;;  %v115_v35 = vld [vmem:[#allocation6 + $0xb0] sm:$0xff]  ;;  %v118_v36 = vld [vmem:[#allocation6 + $0xc8] sm:$0xff]  ;;  %v120_v37 = vld [vmem:[#allocation6 + $0xd8] sm:$0xff] }
  0x64   :  { %425 = vmatprep.subr.bf16.mxu0 %v424_v15  ;;  %v438_v38 = vpack.c.bf16 %v115_v35, %v113_v34  ;;  %v440_v39 = vpack.c.bf16 %v120_v37, %v118_v36  ;;  %v117_v40 = vld [vmem:[#allocation6 + $0xc0] sm:$0xff]  ;;  %v119_v41 = vld [vmem:[#allocation6 + $0xd0] sm:$0xff]  ;;  %v122_v42 = vld [vmem:[#allocation6 + $0xe8] sm:$0xff] }
  0x65   :  { %v124_v43 = vld [vmem:[#allocation6 + $0xf8] sm:$0xff]  ;;  %v442_v44 = vpack.c.bf16 %v119_v41, %v117_v40  ;;  %v121_v46 = vld [vmem:[#allocation6 + $0xe0] sm:$0xff]  ;;  %v123_v47 = vld [vmem:[#allocation6 + $0xf0] sm:$0xff] }
  0x66   :  { %v444_v45 = vpack.c.bf16 %v124_v43, %v122_v42  ;;  %v446_v48 = vpack.c.bf16 %v123_v47, %v121_v46  ;;  %v91_v49 = vld [vmem:[#allocation3] sm:$0xff]  ;;  %v92_v50 = vld [vmem:[#allocation3 + $0x8] sm:$0xff]  ;;  %v230_v51 = vld [vmem:[#allocation9] sm:$0xff] }
  0x67   :  { %427 = vmatpush1.bf16.msra.mxu0 %v426_v20  ;;  %v231_v52 = vld [vmem:[#allocation9 + $0x8] sm:$0xff]  ;;  %v232_v54 = vld [vmem:[#allocation9 + $0x10] sm:$0xff]  ;;  %v233_v55 = vld [vmem:[#allocation9 + $0x18] sm:$0xff] }
  0x68   :  { %429 = vmatprep.subr.bf16.mxu0 %v428_v21  ;;  %v448_v53 = vpack.c.bf16 %v231_v52, %v230_v51  ;;  %v452_v56 = vpack.c.bf16 %v233_v55, %v232_v54  ;;  %v234_v57 = vld [vmem:[#allocation9 + $0x20] sm:$0xff]  ;;  %v235_v58 = vld [vmem:[#allocation9 + $0x28] sm:$0xff]  ;;  %v236_v60 = vld [vmem:[#allocation9 + $0x30] sm:$0xff] }
  0x69   :  { %v456_v59 = vpack.c.bf16 %v235_v58, %v234_v57  ;;  %v237_v61 = vld [vmem:[#allocation9 + $0x38] sm:$0xff]  ;;  %v238_v63 = vld [vmem:[#allocation9 + $0x40] sm:$0xff]  ;;  %v240_v2 = vld [vmem:[#allocation9 + $0x50] sm:$0xff] }
  0x6a   :  { %449 = vmatprep.subr.bf16.mxu1 %v448_v53  ;;  %v460_v62 = vpack.c.bf16 %v237_v61, %v236_v60  ;;  %v241_v3 = vld [vmem:[#allocation9 + $0x58] sm:$0xff]  ;;  %v242_v5 = vld [vmem:[#allocation9 + $0x60] sm:$0xff]  ;;  %v243_v6 = vld [vmem:[#allocation9 + $0x68] sm:$0xff] }
  0x6b   :  { %431 = vmatpush1.bf16.msra.mxu0 %v430_v26  ;;  %451 = vmatpush3.bf16.msra.mxu1 %v448_v53  ;;  %v468_v4 = vpack.c.bf16 %v241_v3, %v240_v2  ;;  %v472_v7 = vpack.c.bf16 %v243_v6, %v242_v5  ;;  %v244_v8 = vld [vmem:[#allocation9 + $0x70] sm:$0xff]  ;;  %v245_v9 = vld [vmem:[#allocation9 + $0x78] sm:$0xff]  ;;  %v362_v36 = vld [vmem:[#allocation11] ss:$0 sm:$0xff] }
  0x6c   :  { %433 = vmatprep.subr.bf16.mxu0 %v432_v27  ;;  %453 = vmatprep.subr.bf16.mxu1 %v452_v56  ;;  %v476_v10 = vpack.c.bf16 %v245_v9, %v244_v8  ;;  %v125_v14 = vld [vmem:[#allocation8] sm:$0x3]  ;;  %v133_v27 = vsub.s32 1, %v128_v12 }
  0x6d   :  { %v130_v15 = vrot.slane %v125_v14, %v129_v13 }
  0x6e   :  { %v134_v29 = vrot.slane %v125_v14, %v133_v27 }
  0x6f   :  { %435 = vmatpush1.bf16.msra.mxu0 %v434_v32  ;;  %455 = vmatpush3.bf16.msra.mxu1 %v452_v56 }
  0x70   :  { %437 = vmatprep.subr.bf16.mxu0 %v436_v33  ;;  %457 = vmatprep.subr.bf16.mxu1 %v456_v59 }
  0x73   :  { %439 = vmatpush1.bf16.msra.mxu0 %v438_v38  ;;  %459 = vmatpush3.bf16.msra.mxu1 %v456_v59 }
  0x74   :  { %441 = vmatprep.subr.bf16.mxu0 %v440_v39  ;;  %461 = vmatprep.subr.bf16.mxu1 %v460_v62 }
  0x77   :  { %443 = vmatpush1.bf16.msra.mxu0 %v442_v44  ;;  %463 = vmatpush3.bf16.msra.mxu1 %v460_v62 }
  0x78   :  { %445 = vmatprep.subr.bf16.mxu0 %v444_v45 }
  0x7b   :  { %447 = vmatpush1.bf16.msra.mxu0 %v446_v48 }
  0x7e   :  { %202 = vmatmul.mubr.f32.vlgmr.msra.gmra.mrb[0].mxu0 %v91_v49 }
  0x7f   :  { %207 = vmatprep.mubr.f32.mxu0 %v648_v0  ;;  %v239_v0 = vld [vmem:[#allocation9 + $0x48] sm:$0xff] }
  0x80   :  { %v464_v1 = vpack.c.bf16 %v239_v0, %v238_v63 }
  0x82   :  { %208 = vmatmul.mubr.f32.gmra.mrb[2].mxu0 %v92_v50  ;;  %465 = vmatprep.subr.bf16.mxu1 %v464_v1 }
  0x83   :  { %467 = vmatpush3.bf16.msra.mxu1 %v464_v1 }
  0x84   :  { %469 = vmatprep.subr.bf16.mxu1 %v468_v4 }
  0x87   :  { %471 = vmatpush3.bf16.msra.mxu1 %v468_v4 }
  0x88   :  { %473 = vmatprep.subr.bf16.mxu1 %v472_v7 }
  0x8b   :  { %475 = vmatpush3.bf16.msra.mxu1 %v472_v7 }
  0x8c   :  { %477 = vmatprep.subr.bf16.mxu1 %v476_v10 }
  0x8f   :  { %479 = vmatpush3.bf16.msra.mxu1 %v476_v10 }
 0x151   :  { %v203_v16 = vpop.f32.mrb[0].mxu0 }
 0x152   :  { %v204_v17 = vadd.f32 %v203_v16, %v130_v15  ;;  %v205_v18 = vpop.f32.mrb[1].mxu0 }
 0x153   :  { %v206_v30 = vadd.f32 %v205_v18, %v134_v29 }
 0x154   :  { %v360_v19 = vmul.f32 -1.442695, %v204_v17 }
 0x155   :  { %v209_v20 = vpop.f32.mrb[2].mxu0 }
 0x156   :  { %491 = vpow2.f32 %v360_v19  ;;  %v210_v21 = vadd.f32 %v209_v20, %v130_v15  ;;  %v211_v22 = vpop.f32.mrb[3].mxu0 }
 0x157   :  { %v212_v33 = vadd.f32 %v211_v22, %v134_v29 }
 0x158   :  { %v361_v23 = vmul.f32 -1.442695, %v210_v21 }
 0x15a   :  { %493 = vpow2.f32 %v361_v23 }
 0x160   :  { %v492_v24 = vpop.eup %491 }
 0x161   :  { %v220_v25 = vadd.f32 1.0, %v492_v24 }
 0x163   :  { %495 = vrcp.f32 %v220_v25 }
 0x164   :  { %v494_v26 = vpop.eup %493 }
 0x165   :  { %v221_v28 = vadd.f32 1.0, %v494_v26 }
 0x167   :  { %497 = vrcp.f32 %v221_v28 }
 0x16d   :  { %v496_v31 = vpop.eup %495 }
 0x16e   :  { %v226_v32 = vmul.f32 %v496_v31, %v206_v30 }
 0x170   :  { %413 = vmatprep.mubr.f32.mxu1 %v226_v32 }
 0x171   :  { %v498_v34 = vpop.eup %497 }
 0x172   :  { %v227_v35 = vmul.f32 %v498_v34, %v212_v33 }
 0x174   :  { %414 = vmatmul.mubr.f32.vlgmr.msra.gmra.mrb[0].mxu1 %v227_v35 }
 0x247   :  { %v415_v37 = vpop.f32.mrb[0].mxu1 }
 0x248   :  { %v338_v38 = vadd.f32 %v415_v37, %v362_v36  ;;  %v312_v39 = vpop.f32.mrb[1].mxu1 }
 0x249   :  { %v337_v40 = vadd.f32 %v362_v36, %v312_v39 }
 0x24a   :  { %340 = vst [vmem:[#allocation12 + $0x8] sm:$0xff] %v338_v38 }
 0x24b   :  { %339 = vst [vmem:[#allocation12] sm:$0xff] %v337_v40 }
 0x24c   :  { %620 = shalt.err (!%p617_p2)
}
 0x24d   :  { %s621_s8 = scalar_lea.hbm %s768_s5, 256 }
 0x24e   :  { %p622_p3 = scmp.ne.s32.totalorder %s768_s5, %s621_s8  ;;  %p625_p4 = scmp.lt.u32.totalorder %s621_s8, %s768_s5 }
 0x250   :  { %p627_p5 = pnand %p625_p4, %p622_p3 }
 0x252   :  { %630 = shalt.err (!%p627_p5)
}
 0x253   :  { %352 = dma.vmem_to_hbm [thread:$0]  %s347_s3, 256, %s768_s5, [#allocation5], %s644_s18, %s644_s18, %s645_s19  }
 0x254   :  { %637 = dma.done.wait [#allocation5], 256  }
 0x255   :  { %638 = vsyncadd [#allocation5], 4294967040 }
 0x256   :  { %356 = vsyncpa [#allocation4], 1 }
 0x257   :  { %357 = vsyncpa [#allocation7], 1 }
 0x258   :  { %358 = vsyncpa [#allocation10], 1 }
 0x259   :  { %359 = vsyncpa [#allocation5], 1 }

</bundles_post_ra>
